<compile_context>
chip_gen: v7x
topology: tpu7x:2x2x1
jax: 0.10.0
libtpu: 0.0.40
codegen_flags: <defaults>
</compile_context>

<pallas_src>
import functools
import math

import jax
import jax.numpy as jnp
from jax.experimental import pallas as pl


def _linformer_kernel(x_ref, mask_ref, wqkv_ref, bqkv_ref, we_ref, wfrep_ref,
                      hmask_m_ref, hmask_g_ref, seg_ones_ref, wch_ref, bc_ref, out_ref,
                      *, batch, seq_len, num_heads, dim_head, max_seq):
    """Single grid-less invocation; every operand lives whole in VMEM (tiny shapes)."""
    B, S, H, dh, M = batch, seq_len, num_heads, dim_head, max_seq
    D = H * dh
    f32 = jnp.float32

    x = x_ref[...]                                                         # (B*S, D)

    # --- fused QKV projection (1/sqrt(dh) folded into Wq/bq host-side), one hoisted bias add
    qkv = jnp.dot(x, wqkv_ref[...], preferred_element_type=f32) + bqkv_ref[...]
    q = qkv[:, :D]                                                         # (B*S, D), pre-scaled
    k = qkv[:, D:2 * D]                                                    # (B*S, D)
    v = qkv[:, 2 * D:]                                                     # (B*S, D)

    # --- Linformer E-projection of K, batched over B (replaces the O(B^2) kron block-diag) ---
    k3 = k.reshape(B, S, D)
    we_b = jnp.broadcast_to(we_ref[...][None], (B, M, S))
    kc = jnp.einsum('bms,bsd->bmd', we_b, k3, preferred_element_type=f32)  # (B, M, D)

    # head-replicated, head-masked projected K along rows:
    #   kch[b, h*M+m, c] = kc[b, m, c] if lane c belongs to head h else 0
    kch = jnp.broadcast_to(kc[:, None], (B, H, M, D)).reshape(B, H * M, D) * hmask_m_ref[...]

    # --- attention scores for all heads at once; lanes are (head, m) -> width H*M ---
    q3 = q.reshape(B, S, D)
    scores = jnp.einsum('bsd,bkd->bsk', q3, kch, preferred_element_type=f32)   # (B, S, H*M)
    scores = scores + mask_ref[...]                                            # additive pad bias

    # --- per-head softmax over each head's M-lane block ---
    # The shift (row max over all H*M lanes) is constant per row, hence constant within every
    # head block -> exact softmax; per-head sums via one block-diagonal ones matmul.
    rowmax = jnp.max(scores, axis=-1, keepdims=True)
    e = jnp.exp(scores - rowmax)
    e2 = e.reshape(B * S, H * M)
    denom = jnp.dot(e2, seg_ones_ref[...], preferred_element_type=f32)         # (B*S, H*M)
    p2 = e2 * pl.reciprocal(denom, approx=False)                               # EUP divide
    # TODO(synk): attention_dropout treated as identity (eval mode); no in-kernel RNG dropout.

    # --- Linformer F-projection of V per head (rows are (b, head, i)) ---
    v3 = v.reshape(B, S, D)
    vh = jnp.broadcast_to(v3[:, None], (B, H, S, D)).reshape(B, H * S, D) * hmask_g_ref[...]
    vp = jnp.dot(vh.reshape(B * H * S, D), wfrep_ref[...], preferred_element_type=f32)  # (B*H*S, M)
    vp3 = vp.reshape(B * H, S, M)

    # --- reassociated tail: T_g = Vp_g^T @ Wc_h (lane width D), heads stacked on rows ---
    wc_g = jnp.broadcast_to(wch_ref[...][None], (B, H, dh, D)).reshape(B * H, dh, D)
    vpT = jnp.swapaxes(vp3, 1, 2)                                              # (B*H, M, S)
    t_g = jnp.einsum('gmj,gjd->gmd', vpT, wc_g, preferred_element_type=f32)    # (B*H, M, D)
    t_stack = t_g.reshape(B, H * M, D)                                         # (B, H*M, D)

    # --- joint contraction of P over (head, M): one batched matmul, no head-sum ---
    p3 = p2.reshape(B, S, H * M)
    y = jnp.einsum('bsk,bkd->bsd', p3, t_stack, preferred_element_type=f32) + bc_ref[...]

    out_ref[...] = y.astype(out_ref.dtype)


def prepare_linformer_params(params, *, num_heads, dim_head):
    """One-time host-side weight preprocessing (fold scale, fuse QKV, reshape projectors,
    build head/segment masks). Batch-independent; call once and reuse across calls."""
    wq, bq, wk, bk, wv, bv, we, wf, wc, bc = params
    f32 = jnp.float32
    H, dh = num_heads, dim_head
    D = H * dh
    M, low_rank = we.shape
    assert low_rank == dh, "reference module requires low_rank == dim_head"

    inv_scale = 1.0 / math.sqrt(float(dim_head))
    wqkv_t = jnp.concatenate([wq.T * inv_scale, wk.T, wv.T], axis=1).astype(f32)       # (D, 3D)
    bqkv = jnp.concatenate([bq.reshape(1, D) * inv_scale,
                            bk.reshape(1, D), bv.reshape(1, D)], axis=1).astype(f32)   # (1, 3D)
    we_p = we.astype(f32)                                                               # (M, S)
    wf_rep = jnp.tile(wf.T.astype(f32), (H, 1))                                         # (D, M)
    wc_h = wc.T.reshape(H, dh, D).astype(f32)                                           # (H, dh, D)
    bc2 = bc.reshape(1, D).astype(f32)

    col_head = jnp.arange(D) // dh
    # row h*M+m keeps only head h's dh lanes (for the projected-K replication)
    hmask_m = (jnp.arange(H * M)[:, None] // M == col_head[None, :]).astype(f32)        # (H*M, D)
    # row h*S+i keeps only head h's dh lanes (for the V replication)
    hmask_g = (jnp.arange(H * low_rank)[:, None] // low_rank
               == col_head[None, :]).astype(f32)                                        # (H*S, D)
    # block-diagonal ones: per-head softmax denominators broadcast back to every lane
    seg = jnp.arange(H * M) // M
    seg_ones = (seg[:, None] == seg[None, :]).astype(f32)                                # (H*M, H*M)

    return (wqkv_t, bqkv, we_p, wf_rep, hmask_m, hmask_g, seg_ones, wc_h, bc2)


@functools.partial(jax.jit, static_argnames=("num_heads", "dim_head"))
def linformer_mha_pallas(x, padding_mask, prep, *, num_heads, dim_head):
    B, S, D = x.shape
    (wqkv_t, bqkv, we_p, wf_rep, hmask_m, hmask_g, seg_ones, wc_h, bc2) = prep
    M, low_rank = we_p.shape
    H, dh = num_heads, dim_head
    assert D == H * dh
    assert S == low_rank == dh, "reference module requires seq_len == low_rank == dim_head"

    # padding mask -> additive f32 bias (0 keep / -1e30 masked), pre-tiled across heads
    bias = jnp.where(padding_mask == 1, -1e30, 0.0).astype(jnp.float32)      # (B, M)
    mask_bias = jnp.tile(bias, (1, H))[:, None, :]                            # (B, 1, H*M)

    kernel = functools.partial(_linformer_kernel, batch=B, seq_len=S,
                               num_heads=H, dim_head=dh, max_seq=M)

    # Single grid-less invocation: every operand is tiny, the whole problem lives in VMEM.
    return pl.pallas_call(
        kernel,
        out_shape=jax.ShapeDtypeStruct((B, S, D), x.dtype),
    )(x.reshape(B * S, D), mask_bias, wqkv_t, bqkv, we_p, wf_rep,
      hmask_m, hmask_g, seg_ones, wc_h, bc2)


def linformer_mha_ref(x, padding_mask, params, *, num_heads, dim_head):
    """Pure-JAX transcription of the PyTorch forward (dropout = identity)."""
    B, S, D = x.shape
    wq, bq, wk, bk, wv, bv, we, wf, wc, bc = params
    dot_scale = math.sqrt(float(dim_head))

    q = (x @ wq.T + bq).reshape(B, S, num_heads, dim_head).transpose(0, 2, 1, 3)
    k = (x @ wk.T + bk).reshape(B, S, num_heads, dim_head).transpose(0, 2, 3, 1)
    k = k @ we.T                                                    # (B,H,dh,max_seq)
    v = (x @ wv.T + bv).reshape(B, S, num_heads, dim_head).transpose(0, 2, 1, 3)
    v = (v @ wf.T).swapaxes(-1, -2)                                 # (B,H,max_seq,S)

    attn = (q @ k) / dot_scale                                      # (B,H,S,max_seq)
    attn = jnp.where(padding_mask[:, None, None, :] == 1, -jnp.inf, attn)
    attn = jax.nn.softmax(attn, axis=-1)
    out = (attn @ v).transpose(0, 2, 1, 3).reshape(B, S, num_heads * dim_head)
    return out @ wc.T + bc.reshape(-1)


if __name__ == "__main__":
    # Small shapes consistent with the module's implicit constraints (S == low_rank == dh).
    B = 2
    num_heads = 4
    dim_head = 8
    dim_model = num_heads * dim_head     # 32
    low_rank = 8                         # == seq_len == dim_head (required by the reference code)
    seq_len = low_rank
    max_seq = 16

    key = jax.random.PRNGKey(0)
    ks = jax.random.split(key, 12)
    scale = 0.05
    wq = (jax.random.normal(ks[0], (dim_model, dim_model)) * scale).astype(jnp.float32)
    bq = (jax.random.normal(ks[1], (1, dim_model)) * scale).astype(jnp.float32)
    wk = (jax.random.normal(ks[2], (dim_model, dim_model)) * scale).astype(jnp.float32)
    bk = (jax.random.normal(ks[3], (1, dim_model)) * scale).astype(jnp.float32)
    wv = (jax.random.normal(ks[4], (dim_model, dim_model)) * scale).astype(jnp.float32)
    bv = (jax.random.normal(ks[5], (1, dim_model)) * scale).astype(jnp.float32)
    we = (jax.random.normal(ks[6], (max_seq, low_rank)) * scale).astype(jnp.float32)
    wf = (jax.random.normal(ks[7], (max_seq, low_rank)) * scale).astype(jnp.float32)
    wc = (jax.random.normal(ks[8], (dim_model, dim_model)) * scale).astype(jnp.float32)
    bc = (jax.random.normal(ks[9], (1, dim_model)) * scale).astype(jnp.float32)
    params = (wq, bq, wk, bk, wv, bv, we, wf, wc, bc)

    x = jax.random.normal(ks[10], (B, seq_len, dim_model), dtype=jnp.float32)
    # padding mask over the projected (max_seq) axis: 1 = masked, 0 = keep
    padding_mask = jnp.zeros((B, max_seq), dtype=jnp.int32)
    padding_mask = padding_mask.at[0, -3:].set(1)
    padding_mask = padding_mask.at[1, -5:].set(1)

    # One-time weight preprocessing, hoisted out of the per-call path.
    prep = prepare_linformer_params(params, num_heads=num_heads, dim_head=dim_head)
    prep = jax.block_until_ready(prep)

    out = linformer_mha_pallas(x, padding_mask, prep,
                               num_heads=num_heads, dim_head=dim_head)
    out = jax.block_until_ready(out)

    ref = linformer_mha_ref(x, padding_mask, params,
                            num_heads=num_heads, dim_head=dim_head)
    assert out.shape == (B, seq_len, dim_model), out.shape
    assert jnp.allclose(out, ref, rtol=1e-4, atol=1e-4), float(jnp.max(jnp.abs(out - ref)))

    print("KERNEL_OK")
</pallas_src>

<mosaic_0001>
module attributes {stable_mosaic.version = 11 : i64} {
  func.func @_linformer_kernel(%arg0: memref<16x32xf32, #tpu.memory_space<vmem>>, %arg1: memref<2x1x64xf32, #tpu.memory_space<vmem>>, %arg2: memref<32x96xf32, #tpu.memory_space<vmem>>, %arg3: memref<1x96xf32, #tpu.memory_space<vmem>>, %arg4: memref<16x8xf32, #tpu.memory_space<vmem>>, %arg5: memref<32x16xf32, #tpu.memory_space<vmem>>, %arg6: memref<64x32xf32, #tpu.memory_space<vmem>>, %arg7: memref<32x32xf32, #tpu.memory_space<vmem>>, %arg8: memref<64x64xf32, #tpu.memory_space<vmem>>, %arg9: memref<4x8x32xf32, #tpu.memory_space<vmem>>, %arg10: memref<1x32xf32, #tpu.memory_space<vmem>>, %arg11: memref<2x8x32xf32, #tpu.memory_space<vmem>>) attributes {dimension_semantics = [], scalar_prefetch = 0 : i64, scratch_operands = 0 : i64, tpu.core_type = #tpu.core_type<tc>} {
    %c0 = arith.constant 0 : index
    %c0_0 = arith.constant 0 : index
    %0 = vector.load %arg0[%c0, %c0_0] : memref<16x32xf32, #tpu.memory_space<vmem>>, vector<16x32xf32>
    %c0_1 = arith.constant 0 : index
    %c0_2 = arith.constant 0 : index
    %1 = vector.load %arg2[%c0_1, %c0_2] : memref<32x96xf32, #tpu.memory_space<vmem>>, vector<32x96xf32>
    %cst = arith.constant dense<0.000000e+00> : vector<16x96xf32>
    %2 = tpu.matmul %0, %1, %cst {dimension_numbers = #tpu.dot_dimension_numbers<[1], [0], [0], [1], [0, 0, 1, 1], [], []>} : vector<16x32xf32>, vector<32x96xf32>, vector<16x96xf32> -> vector<16x96xf32>
    %c0_3 = arith.constant 0 : index
    %c0_4 = arith.constant 0 : index
    %3 = vector.load %arg3[%c0_3, %c0_4] : memref<1x96xf32, #tpu.memory_space<vmem>>, vector<1x96xf32>
    %4 = vector.broadcast %3 : vector<1x96xf32> to vector<16x96xf32>
    %5 = arith.addf %2, %4 : vector<16x96xf32>
    %6 = vector.extract_strided_slice %5 {offsets = [0, 0], sizes = [16, 32], strides = [1, 1]} : vector<16x96xf32> to vector<16x32xf32>
    %7 = vector.extract_strided_slice %5 {offsets = [0, 32], sizes = [16, 32], strides = [1, 1]} : vector<16x96xf32> to vector<16x32xf32>
    %8 = vector.extract_strided_slice %5 {offsets = [0, 64], sizes = [16, 32], strides = [1, 1]} : vector<16x96xf32> to vector<16x32xf32>
    %9 = vector.shape_cast %7 : vector<16x32xf32> to vector<2x8x32xf32>
    %c0_5 = arith.constant 0 : index
    %c0_6 = arith.constant 0 : index
    %10 = vector.load %arg4[%c0_5, %c0_6] : memref<16x8xf32, #tpu.memory_space<vmem>>, vector<16x8xf32>
    %11 = vector.shape_cast %10 : vector<16x8xf32> to vector<1x16x8xf32>
    %12 = vector.shape_cast %11 : vector<1x16x8xf32> to vector<1x16x8xf32>
    %13 = vector.broadcast %12 : vector<1x16x8xf32> to vector<2x16x8xf32>
    "tpu.trace_start"() <{level = 10 : i32, message = "bms,bsd->bmd"}> : () -> ()
    %cst_7 = arith.constant dense<0.000000e+00> : vector<2x16x32xf32>
    %14 = tpu.matmul %13, %9, %cst_7 {dimension_numbers = #tpu.dot_dimension_numbers<[2], [1], [1], [2], [0, 0, 0, 1, 1, 2], [0], [0]>} : vector<2x16x8xf32>, vector<2x8x32xf32>, vector<2x16x32xf32> -> vector<2x16x32xf32>
    "tpu.trace_stop"() : () -> ()
    %15 = vector.shape_cast %14 : vector<2x16x32xf32> to vector<2x1x16x32xf32>
    %16 = vector.shape_cast %15 : vector<2x1x16x32xf32> to vector<2x1x16x32xf32>
    %17 = vector.broadcast %16 : vector<2x1x16x32xf32> to vector<2x4x16x32xf32>
    %18 = vector.shape_cast %17 : vector<2x4x16x32xf32> to vector<2x64x32xf32>
    %c0_8 = arith.constant 0 : index
    %c0_9 = arith.constant 0 : index
    %19 = vector.load %arg6[%c0_8, %c0_9] : memref<64x32xf32, #tpu.memory_space<vmem>>, vector<64x32xf32>
    %20 = vector.shape_cast %19 : vector<64x32xf32> to vector<1x64x32xf32>
    %21 = vector.broadcast %20 : vector<1x64x32xf32> to vector<2x64x32xf32>
    %22 = arith.mulf %18, %21 : vector<2x64x32xf32>
    %23 = vector.shape_cast %6 : vector<16x32xf32> to vector<2x8x32xf32>
    "tpu.trace_start"() <{level = 10 : i32, message = "bsd,bkd->bsk"}> : () -> ()
    %cst_10 = arith.constant dense<0.000000e+00> : vector<2x8x64xf32>
    %24 = tpu.matmul %23, %22, %cst_10 {dimension_numbers = #tpu.dot_dimension_numbers<[2], [2], [1], [1], [0, 0, 0, 1, 1, 1], [0], [0]>} : vector<2x8x32xf32>, vector<2x64x32xf32>, vector<2x8x64xf32> -> vector<2x8x64xf32>
    "tpu.trace_stop"() : () -> ()
    %c0_11 = arith.constant 0 : index
    %c0_12 = arith.constant 0 : index
    %c0_13 = arith.constant 0 : index
    %25 = vector.load %arg1[%c0_11, %c0_12, %c0_13] : memref<2x1x64xf32, #tpu.memory_space<vmem>>, vector<2x1x64xf32>
    %26 = vector.broadcast %25 : vector<2x1x64xf32> to vector<2x8x64xf32>
    %27 = arith.addf %24, %26 : vector<2x8x64xf32>
    %cst_14 = arith.constant dense<0xFF800000> : vector<2x8xf32>
    %28 = vector.multi_reduction <maximumf>, %27, %cst_14 [2] : vector<2x8x64xf32> to vector<2x8xf32>
    %29 = vector.shape_cast %28 : vector<2x8xf32> to vector<2x8x1xf32>
    %30 = vector.broadcast %29 : vector<2x8x1xf32> to vector<2x8x64xf32>
    %31 = arith.subf %27, %30 : vector<2x8x64xf32>
    %32 = math.exp %31 : vector<2x8x64xf32>
    %33 = vector.shape_cast %32 : vector<2x8x64xf32> to vector<16x64xf32>
    %c0_15 = arith.constant 0 : index
    %c0_16 = arith.constant 0 : index
    %34 = vector.load %arg8[%c0_15, %c0_16] : memref<64x64xf32, #tpu.memory_space<vmem>>, vector<64x64xf32>
    %cst_17 = arith.constant dense<0.000000e+00> : vector<16x64xf32>
    %35 = tpu.matmul %33, %34, %cst_17 {dimension_numbers = #tpu.dot_dimension_numbers<[1], [0], [0], [1], [0, 0, 1, 1], [], []>} : vector<16x64xf32>, vector<64x64xf32>, vector<16x64xf32> -> vector<16x64xf32>
    %36 = tpu.reciprocal %35 : vector<16x64xf32> -> vector<16x64xf32>
    %37 = arith.mulf %33, %36 : vector<16x64xf32>
    %38 = vector.shape_cast %8 : vector<16x32xf32> to vector<2x8x32xf32>
    %39 = vector.shape_cast %38 : vector<2x8x32xf32> to vector<2x1x8x32xf32>
    %40 = vector.shape_cast %39 : vector<2x1x8x32xf32> to vector<2x1x8x32xf32>
    %41 = vector.broadcast %40 : vector<2x1x8x32xf32> to vector<2x4x8x32xf32>
    %42 = vector.shape_cast %41 : vector<2x4x8x32xf32> to vector<2x32x32xf32>
    %c0_18 = arith.constant 0 : index
    %c0_19 = arith.constant 0 : index
    %43 = vector.load %arg7[%c0_18, %c0_19] : memref<32x32xf32, #tpu.memory_space<vmem>>, vector<32x32xf32>
    %44 = vector.shape_cast %43 : vector<32x32xf32> to vector<1x32x32xf32>
    %45 = vector.broadcast %44 : vector<1x32x32xf32> to vector<2x32x32xf32>
    %46 = arith.mulf %42, %45 : vector<2x32x32xf32>
    %47 = vector.shape_cast %46 : vector<2x32x32xf32> to vector<64x32xf32>
    %c0_20 = arith.constant 0 : index
    %c0_21 = arith.constant 0 : index
    %48 = vector.load %arg5[%c0_20, %c0_21] : memref<32x16xf32, #tpu.memory_space<vmem>>, vector<32x16xf32>
    %cst_22 = arith.constant dense<0.000000e+00> : vector<64x16xf32>
    %49 = tpu.matmul %47, %48, %cst_22 {dimension_numbers = #tpu.dot_dimension_numbers<[1], [0], [0], [1], [0, 0, 1, 1], [], []>} : vector<64x32xf32>, vector<32x16xf32>, vector<64x16xf32> -> vector<64x16xf32>
    %50 = vector.shape_cast %49 : vector<64x16xf32> to vector<8x8x16xf32>
    %c0_23 = arith.constant 0 : index
    %c0_24 = arith.constant 0 : index
    %c0_25 = arith.constant 0 : index
    %51 = vector.load %arg9[%c0_23, %c0_24, %c0_25] : memref<4x8x32xf32, #tpu.memory_space<vmem>>, vector<4x8x32xf32>
    %52 = vector.shape_cast %51 : vector<4x8x32xf32> to vector<1x4x8x32xf32>
    %53 = vector.shape_cast %52 : vector<1x4x8x32xf32> to vector<1x4x8x32xf32>
    %54 = vector.broadcast %53 : vector<1x4x8x32xf32> to vector<2x4x8x32xf32>
    %55 = vector.shape_cast %54 : vector<2x4x8x32xf32> to vector<8x8x32xf32>
    %56 = tpu.transpose %50, [0, 2, 1] : vector<8x8x16xf32> -> vector<8x16x8xf32>
    "tpu.trace_start"() <{level = 10 : i32, message = "gmj,gjd->gmd"}> : () -> ()
    %cst_26 = arith.constant dense<0.000000e+00> : vector<8x16x32xf32>
    %57 = tpu.matmul %56, %55, %cst_26 {dimension_numbers = #tpu.dot_dimension_numbers<[2], [1], [1], [2], [0, 0, 0, 1, 1, 2], [0], [0]>} : vector<8x16x8xf32>, vector<8x8x32xf32>, vector<8x16x32xf32> -> vector<8x16x32xf32>
    "tpu.trace_stop"() : () -> ()
    %58 = vector.shape_cast %57 : vector<8x16x32xf32> to vector<2x64x32xf32>
    %59 = vector.shape_cast %37 : vector<16x64xf32> to vector<2x8x64xf32>
    "tpu.trace_start"() <{level = 10 : i32, message = "bsk,bkd->bsd"}> : () -> ()
    %cst_27 = arith.constant dense<0.000000e+00> : vector<2x8x32xf32>
    %60 = tpu.matmul %59, %58, %cst_27 {dimension_numbers = #tpu.dot_dimension_numbers<[2], [1], [1], [2], [0, 0, 0, 1, 1, 2], [0], [0]>} : vector<2x8x64xf32>, vector<2x64x32xf32>, vector<2x8x32xf32> -> vector<2x8x32xf32>
    "tpu.trace_stop"() : () -> ()
    %c0_28 = arith.constant 0 : index
    %c0_29 = arith.constant 0 : index
    %61 = vector.load %arg10[%c0_28, %c0_29] : memref<1x32xf32, #tpu.memory_space<vmem>>, vector<1x32xf32>
    %62 = vector.shape_cast %61 : vector<1x32xf32> to vector<1x1x32xf32>
    %63 = vector.broadcast %62 : vector<1x1x32xf32> to vector<2x8x32xf32>
    %64 = arith.addf %60, %63 : vector<2x8x32xf32>
    %c0_30 = arith.constant 0 : index
    %c0_31 = arith.constant 0 : index
    %c0_32 = arith.constant 0 : index
    %65 = vector.load %arg11[%c0_30, %c0_31, %c0_32] : memref<2x8x32xf32, #tpu.memory_space<vmem>>, vector<2x8x32xf32>
    tpu.vector_store %arg11[%c0_30, %c0_31, %c0_32], %64 {strides = array<i32>} : memref<2x8x32xf32, #tpu.memory_space<vmem>>, vector<2x8x32xf32>,
    return
  }
}

</mosaic_0001>

<bundles_post_ra>
// kernel: linformer_mha_pallas.1
= control target key start
LH: loop header
LB: loop body
LE: loop exit
PB: predicated region body
PF: predicated region fallthrough
CT: control target
= control target key end

     0   :  { %16 = vsyncpa [#allocation3], 0  ;;  %s2722_s0 = inlined_call_operand.hbm [shape: f32[16,32], index: 0, kind: input, shape index: {}]   ;;  %s2723_s1 = inlined_call_operand.vmem [shape: f32[2,1,64], index: 1, kind: input, shape index: {}]   ;;  %s2724_s2 = inlined_call_operand.vmem [shape: f32[32,96], index: 2, kind: input, shape index: {}]   ;;  %s2725_s3 = inlined_call_operand.vmem [shape: f32[1,96], index: 3, kind: input, shape index: {}]   ;;  %s2726_s4 = inlined_call_operand.vmem [shape: f32[16,8], index: 4, kind: input, shape index: {}]   ;;  %s2727_s5 = inlined_call_operand.vmem [shape: f32[32,16], index: 5, kind: input, shape index: {}]   ;;  %s2728_s6 = inlined_call_operand.vmem [shape: f32[64,32], index: 6, kind: input, shape index: {}]   ;;  %s2729_s7 = inlined_call_operand.vmem [shape: f32[32,32], index: 7, kind: input, shape index: {}]   ;;  %s2730_s8 = inlined_call_operand.vmem [shape: f32[64,64], index: 8, kind: input, shape index: {}]   ;;  %s2731_s9 = inlined_call_operand.vmem [shape: f32[4,8,32], index: 9, kind: input, shape index: {}]   ;;  %s2732_s10 = inlined_call_operand.vmem [shape: f32[1,32], index: 10, kind: input, shape index: {}]   ;;  %s2733_s11 = inlined_call_operand.hbm [shape: f32[2,8,32], index: 11, kind: output, shape index: {}]  }
   0x1   :  { %17 = vsyncpa [#allocation4], 0  ;;  %s2387_s17 = smov [#allocation2]   ;;  %s2339_s21 = scalar_lea.hbm %s2722_s0, 256 }
   0x2   :  { %s23_s18 = sshll.u32 %s2387_s17, 4  ;;  %p2340_p0 = scmp.ne.s32.totalorder %s2722_s0, %s2339_s21  ;;  %s24_s18 = int_to_ptr.vmem [resolvable:$true] %s23_s18 }
   0x3   :  { %p2343_p1 = scmp.lt.u32.totalorder %s2339_s21, %s2722_s0 }
   0x5   :  { %p2345_p2 = pnand %p2343_p1, %p2340_p0 }
   0x7   :  { %2348 = shalt.err (!%p2345_p2)
}
   0x8   :  { %s2349_s26 = scalar_lea.vmem %s24_s18, 256  ;;  %p2354_p4 = scmp.lt.s32.totalorder %s24_s18, %s24_s18 }
   0x9   :  { %p2350_p3 = scmp.ne.s32.totalorder %s24_s18, %s2349_s26  ;;  %p2355_p5 = scmp.lt.s32.totalorder %s2349_s26, %s2349_s26 }
   0xb   :  { %p2356_p6 = por %p2355_p5, %p2354_p4 }
   0xd   :  { %p2357_p7 = pnand %p2356_p6, %p2350_p3 }
   0xf   :  { %2360 = shalt.err (!%p2357_p7)
}
  0x10   :  { %s2388_s27 = smov 128   ;;  %s2389_s28 = smov 8  }
  0x11   :  { %29 = dma.hbm_to_vmem [thread:$0]  %s2722_s0, 256, %s24_s18, [#allocation3], %s2388_s27, %s2388_s27, %s2389_s28  }
  0x12   :  { %2383 = dma.done.wait [#allocation3], 256  }
  0x13   :  { %2384 = vsyncadd [#allocation3], 4294967040  ;;  %vm66_vm0 = vcmask 261120   ;;  %v55_v0 = vld [vmem:[%s2724_s2] sm:$0xff]  ;;  %v56_v1 = vld [vmem:[%s2724_s2 + $0x8] sm:$0xff]  ;;  %s2390_s21 = smov 64  }
  0x14   :  { %v57_v2 = vld [vmem:[%s2724_s2 + $0x10] sm:$0xff]  ;;  %v2234_v3 = vpack.c.bf16 %v56_v1, %v55_v0  ;;  %v58_v4 = vld [vmem:[%s2724_s2 + $0x18] sm:$0xff]  ;;  %v53_v5 = vld [vmem:[#allocation2] sm:$0xff]  ;;  %vm154_vm1 = vcmask 64512   ;;  %s2391_s12 = smov 96   ;;  %v2392_v33 = vmov 0.0|0.0  }
  0x15   :  { %v2238_v6 = vpack.c.bf16 %v58_v4, %v57_v2  ;;  %2066 = vmatprep.mubr.msk.f32.mxu0 %vm66_vm0, %v53_v5  ;;  %v651_v7 = vld [vmem:[%s2729_s7] sm:$0xff]  ;;  %v652_v8 = vld [vmem:[%s2729_s7 + $0x8] sm:$0xff]  ;;  %v654_v10 = vld [vmem:[%s2729_s7 + $0x18] sm:$0xff]  ;;  %vm2393_vm2 = vmmov 0   ;;  %v2394_v34 = vmov 0.0   ;;  %vm545_vm4 = vcmask 523264  }
  0x16   :  { %2235 = vmatprep.subr.bf16.mxu0 %v2234_v3  ;;  %659 = vrot.lane.b32.xlu1 %v651_v7, %s2390_s21  ;;  %v54_v9 = vld [vmem:[#allocation2 + $0x8] sm:$0xff]  ;;  %v148_v11 = vld [vmem:[%s2726_s4] sm:$0xff]  ;;  %v653_v22 = vld [vmem:[%s2729_s7 + $0x10] sm:$0xff]  ;;  %s2395_s17 = smov [#allocation5]  }
  0x17   :  { %2237 = vmatpush3.bf16.msra.mxu0 %v2234_v3  ;;  %2071 = vmatprep.mubr.msk.f32.mxu1 %vm154_vm1, %v148_v11  ;;  %v1908_v14 = vld [vmem:[%s2725_s3] ss:$0 sm:$0xff]  ;;  %v149_v27 = vld [vmem:[%s2726_s4 + $0x8] sm:$0xff]  ;;  %v318_v36 = vld [vmem:[%s2728_s6 + $0x18] sm:$0xff]  ;;  %s1896_s19 = sshll.u32 %s2395_s17, 4  ;;  %s1897_s19 = int_to_ptr.vmem [resolvable:$true] %s1896_s19 }
  0x18   :  { %2239 = vmatprep.subr.bf16.mxu0 %v2238_v6  ;;  %v316_v35 = vld [vmem:[%s2728_s6 + $0x8] sm:$0xff]  ;;  %v322_v38 = vld [vmem:[%s2728_s6 + $0x38] sm:$0xff]  ;;  %v315_v39 = vld [vmem:[%s2728_s6] sm:$0xff]  ;;  %s2361_s20 = scalar_lea.vmem %s1897_s19, 256  ;;  %p2366_p9 = scmp.lt.s32.totalorder %s1897_s19, %s1897_s19 }
  0x19   :  { %v320_v37 = vld [vmem:[%s2728_s6 + $0x28] sm:$0xff]  ;;  %v317_v40 = vld [vmem:[%s2728_s6 + $0x10] sm:$0xff]  ;;  %v319_v41 = vld [vmem:[%s2728_s6 + $0x20] sm:$0xff]  ;;  %p2362_p8 = scmp.ne.s32.totalorder %s1897_s19, %s2361_s20  ;;  %p2367_p10 = scmp.lt.s32.totalorder %s2361_s20, %s2361_s20 }
  0x1a   :  { %661 = vrot.lane.b32.xlu1 %v652_v8, %s2390_s21  ;;  %v321_v42 = vld [vmem:[%s2728_s6 + $0x30] sm:$0xff]  ;;  %vm2568_vm3 = vmpackc.low %vm66_vm0, %vm66_vm0  ;;  %v679_v8 = vld [vmem:[%s2727_s5] sm:$0xff] }
  0x1b   :  { %2241 = vmatpush3.bf16.msra.mxu0 %v2238_v6  ;;  %p2368_p11 = por %p2367_p10, %p2366_p9 }
  0x1c   :  { %2258 = vmatprep.subr.bf16.mxu0 %v2392_v33 }
  0x1d   :  { %p2369_p12 = pnand %p2368_p11, %p2362_p8 }
  0x1e   :  { %2067 = vmatmul.mubr.msk.f32.vlgmr.msra.gmra.mrb[0].mxu0 %vm66_vm0, %v54_v9  ;;  %665 = vrot.lane.b32.xlu1 %v654_v10, %s2390_s21  ;;  %v680_v9 = vld [vmem:[%s2727_s5 + $0x8] sm:$0xff] }
  0x1f   :  { %2114 = vmatprep.mubr.msk.f32.mxu0 %vm2393_vm2, %v2394_v34  ;;  %v2290_v10 = vpack.c.bf16 %v680_v9, %v679_v8 }
  0x88   :  { %v660_v12 = vpop.permute.xlu1 %659 }
  0x8c   :  { %v662_v13 = vpop.permute.xlu1 %661 }
  0x90   :  { %v666_v19 = vpop.permute.xlu1 %665 }
  0xf1   :  { %v2068_v15 = vpop.f32.mrb[0].mxu0 }
  0xf2   :  { %v139_v16 = vpop.f32.mrb[1].mxu0  ;;  %v2508_v20 = vadd.f32 %v2068_v15, %v1908_v14 }
  0xf3   :  { %v2504_v17 = vadd.f32 %v1908_v14, %v139_v16 }
  0xf4   :  { %v676_v23 = vmul.f32 %v662_v13, %v2508_v20  ;;  %v678_v25 = vmul.f32 %v666_v19, %v2508_v20  ;;  %v675_v31 = vmul.f32 %v660_v12, %v2508_v20 }
  0xf5   :  { %151 = vrot.lane.b32.xlu0 %v2504_v17, %s2391_s12  ;;  %v672_v18 = vmul.f32 %v662_v13, %v2504_v17  ;;  %v674_v21 = vmul.f32 %v666_v19, %v2504_v17  ;;  %v671_v24 = vmul.f32 %v660_v12, %v2504_v17  ;;  %v682_v12 = vld [vmem:[%s2727_s5 + $0x18] sm:$0xff] }
  0xf7   :  { %693 = vrot.lane.b32.xlu1 %v672_v18, %s2390_s21 }
  0xf9   :  { %237 = vrot.lane.b32.xlu0 %v2508_v20, %s2391_s12 }
  0xfb   :  { %697 = vrot.lane.b32.xlu1 %v674_v21, %s2390_s21 }
  0xfd   :  { %663 = vrot.lane.b32.xlu0 %v653_v22, %s2390_s21  ;;  %v1915_v22 = vld [vmem:[%s2723_s1] ss:$0 sm:$0xff] }
  0xff   :  { %701 = vrot.lane.b32.xlu1 %v676_v23, %s2390_s21 }
 0x101   :  { %691 = vrot.lane.b32.xlu0 %v671_v24, %s2390_s21 }
 0x103   :  { %705 = vrot.lane.b32.xlu1 %v678_v25, %s2390_s21 }
 0x167   :  { %v152_v26 = vpop.permute.xlu0 %151 }
 0x168   :  { %2069 = vmatprep.subr.mxu1 %v152_v26 }
 0x169   :  { %2070 = vmatpush3.msra.mxu1 %v152_v26  ;;  %v694_v15 = vpop.permute.xlu1 %693  ;;  %v1916_v26 = vld [vmem:[%s2723_s1 + $0x1] ss:$0 sm:$0xff] }
 0x16a   :  { %2072 = vmatmul.mubr.msk.f32.vlgmr.msra.gmra.mrb[0].mxu1 %vm154_vm1, %v149_v27 }
 0x16b   :  { %v238_v28 = vpop.permute.xlu0 %237  ;;  %2076 = vmatprep.mubr.msk.f32.mxu1 %vm154_vm1, %v148_v11  ;;  %v681_v11 = vld [vmem:[%s2727_s5 + $0x10] sm:$0xff] }
 0x16c   :  { %2074 = vmatprep.subr.mxu1 %v238_v28  ;;  %v2294_v13 = vpack.c.bf16 %v682_v12, %v681_v11 }
 0x16d   :  { %2075 = vmatpush3.msra.mxu1 %v238_v28  ;;  %v698_v18 = vpop.permute.xlu1 %697 }
 0x16e   :  { %2077 = vmatmul.mubr.msk.f32.vlgmr.msra.gmra.mrb[2].mxu1 %vm154_vm1, %v149_v27  ;;  %2242 = vmatprep.subr.bf16.mxu1 %v2392_v33 }
 0x16f   :  { %v664_v29 = vpop.permute.xlu0 %663  ;;  %2095 = vmatprep.mubr.msk.f32.mxu1 %vm2393_vm2, %v2394_v34 }
 0x170   :  { %v673_v30 = vmul.f32 %v664_v29, %v2504_v17  ;;  %v677_v32 = vmul.f32 %v664_v29, %v2508_v20 }
 0x172   :  { %695 = vrot.lane.b32.xlu0 %v673_v30, %s2390_s21 }
 0x173   :  { %v692_v14 = vpop.permute.xlu0 %691 }
 0x176   :  { %699 = vrot.lane.b32.xlu0 %v675_v31, %s2390_s21 }
 0x17a   :  { %703 = vrot.lane.b32.xlu0 %v677_v32, %s2390_s21 }
 0x1e4   :  { %v696_v16 = vpop.permute.xlu0 %695 }
 0x1e8   :  { %v700_v19 = vpop.permute.xlu0 %699 }
 0x1ec   :  { %v704_v21 = vpop.permute.xlu0 %703 }
 0x23d   :  { %v2073_v43 = vpop.f32.mrb[0].mxu1 }
 0x23e   :  { %v324_v44 = vmul.f32 %v2073_v43, %v316_v35  ;;  %v326_v45 = vmul.f32 %v2073_v43, %v318_v36  ;;  %v328_v46 = vmul.f32 %v2073_v43, %v320_v37  ;;  %v330_v47 = vmul.f32 %v2073_v43, %v322_v38  ;;  %v227_v48 = vpop.f32.mrb[1].mxu1  ;;  %v560_v43 = vld [vmem:[%s2730_s8 + $0x10] sm:$0xff] }
 0x23f   :  { %v323_v49 = vmul.f32 %v315_v39, %v227_v48  ;;  %v325_v50 = vmul.f32 %v317_v40, %v227_v48  ;;  %v327_v51 = vmul.f32 %v319_v41, %v227_v48  ;;  %v329_v52 = vmul.f32 %v321_v42, %v227_v48  ;;  %v562_v48 = vld [vmem:[%s2730_s8 + $0x20] sm:$0xff] }
 0x241   :  { %v2243_v54 = vpack.c.bf16 %v324_v44, %v323_v49  ;;  %v2247_v55 = vpack.c.bf16 %v326_v45, %v325_v50  ;;  %v2251_v56 = vpack.c.bf16 %v328_v46, %v327_v51  ;;  %v2255_v57 = vpack.c.bf16 %v330_v47, %v329_v52  ;;  %v2078_v58 = vpop.f32.mrb[2].mxu1  ;;  %v561_v44 = vld [vmem:[%s2730_s8 + $0x18] sm:$0xff]  ;;  %v563_v49 = vld [vmem:[%s2730_s8 + $0x28] sm:$0xff]  ;;  %v564_v50 = vld [vmem:[%s2730_s8 + $0x30] sm:$0xff] }
 0x242   :  { %v332_v59 = vmul.f32 %v2078_v58, %v316_v35  ;;  %v334_v60 = vmul.f32 %v2078_v58, %v318_v36  ;;  %v336_v61 = vmul.f32 %v2078_v58, %v320_v37  ;;  %v338_v62 = vmul.f32 %v2078_v58, %v322_v38  ;;  %v306_v63 = vpop.f32.mrb[3].mxu1  ;;  %v558_v38 = vld [vmem:[%s2730_s8] sm:$0xff]  ;;  %v565_v52 = vld [vmem:[%s2730_s8 + $0x38] sm:$0xff] }
 0x243   :  { %v331_v0 = vmul.f32 %v315_v39, %v306_v63  ;;  %v333_v1 = vmul.f32 %v317_v40, %v306_v63  ;;  %v335_v2 = vmul.f32 %v319_v41, %v306_v63  ;;  %v337_v3 = vmul.f32 %v321_v42, %v306_v63  ;;  %2245 = vmatpush3.bf16.xpose.msk.msra.mxu1 %vm2568_vm3, %v2243_v54  ;;  %v559_v39 = vld [vmem:[%s2730_s8 + $0x8] sm:$0xff]  ;;  %v828_v54 = vld [vmem:[%s2731_s9] sm:$0xff] }
 0x244   :  { %2246 = vmatprep.subr.bf16.mxu1 %v2392_v33  ;;  %v2274_v40 = vpack.c.bf16 %v559_v39, %v558_v38  ;;  %v2278_v45 = vpack.c.bf16 %v561_v44, %v560_v43  ;;  %v2282_v51 = vpack.c.bf16 %v563_v49, %v562_v48  ;;  %v2286_v53 = vpack.c.bf16 %v565_v52, %v564_v50  ;;  %v1961_v49 = vld [vmem:[%s2732_s10] ss:$0 sm:$0xff] }
 0x245   :  { %v2259_v4 = vpack.c.bf16 %v332_v59, %v331_v0  ;;  %v2263_v5 = vpack.c.bf16 %v334_v60, %v333_v1  ;;  %v2267_v6 = vpack.c.bf16 %v336_v61, %v335_v2  ;;  %v2271_v7 = vpack.c.bf16 %v338_v62, %v337_v3  ;;  %v829_v0 = vld [vmem:[%s2731_s9 + $0x8] sm:$0xff]  ;;  %v831_v3 = vld [vmem:[%s2731_s9 + $0x18] sm:$0xff] }
 0x247   :  { %2261 = vmatpush3.bf16.xpose.msk.msra.mxu0 %vm2568_vm3, %v2259_v4 }
 0x248   :  { %2262 = vmatprep.subr.bf16.mxu0 %v2392_v33 }
 0x24b   :  { %2249 = vmatpush3.bf16.xpose.msk.msra.mxu1 %vm2568_vm3, %v2247_v55  ;;  %v830_v55 = vld [vmem:[%s2731_s9 + $0x10] sm:$0xff] }
 0x24c   :  { %2250 = vmatprep.subr.bf16.mxu1 %v2392_v33 }
 0x24f   :  { %2265 = vmatpush3.bf16.xpose.msk.msra.mxu0 %vm2568_vm3, %v2263_v5 }
 0x250   :  { %2266 = vmatprep.subr.bf16.mxu0 %v2392_v33 }
 0x253   :  { %2253 = vmatpush3.bf16.xpose.msk.msra.mxu1 %vm2568_vm3, %v2251_v56 }
 0x254   :  { %2254 = vmatprep.subr.bf16.mxu1 %v2392_v33 }
 0x257   :  { %2269 = vmatpush3.bf16.xpose.msk.msra.mxu0 %vm2568_vm3, %v2267_v6 }
 0x258   :  { %2270 = vmatprep.subr.bf16.mxu0 %v2392_v33 }
 0x25b   :  { %2257 = vmatpush3.bf16.xpose.msk.msra.mxu1 %vm2568_vm3, %v2255_v57 }
 0x25c   :  { %2275 = vmatprep.subr.bf16.mxu1 %v2274_v40 }
 0x25f   :  { %2273 = vmatpush3.bf16.xpose.msk.msra.mxu0 %vm2568_vm3, %v2271_v7 }
 0x260   :  { %2291 = vmatprep.subr.bf16.mxu0 %v2290_v10 }
 0x262   :  { %2096 = vmatmul.mubr.msk.f32.vlgmr.msra.gmra.mrb[4].mxu1 %vm66_vm0, %v2504_v17  ;;  %v702_v17 = vpop.permute.xlu1 %701 }
 0x263   :  { %2277 = vmatpush3.bf16.msra.mxu1 %v2274_v40 }
 0x264   :  { %2279 = vmatprep.subr.bf16.mxu1 %v2278_v45 }
 0x266   :  { %2115 = vmatmul.mubr.msk.f32.vlgmr.msra.gmra.mrb[2].mxu0 %vm66_vm0, %v2508_v20  ;;  %v706_v20 = vpop.permute.xlu1 %705 }
 0x267   :  { %2293 = vmatpush3.bf16.msra.mxu0 %v2290_v10  ;;  %2144 = vmatprep.mubr.msk.f32.mxu0 %vm66_vm0, %v692_v14 }
 0x268   :  { %2295 = vmatprep.subr.bf16.mxu0 %v2294_v13  ;;  %2281 = vmatpush3.bf16.msra.mxu1 %v2278_v45 }
 0x269   :  { %2283 = vmatprep.subr.bf16.mxu1 %v2282_v51 }
 0x26b   :  { %2297 = vmatpush3.bf16.msra.mxu0 %v2294_v13 }
 0x26c   :  { %2285 = vmatpush3.bf16.msra.mxu1 %v2282_v51  ;;  %2166 = vmatprep.subr.mxu0 %v830_v55 }
 0x26d   :  { %2287 = vmatprep.subr.bf16.mxu1 %v2286_v53 }
 0x26e   :  { %2145 = vmatmul.mubr.msk.f32.vlgmr.msra.gmra.mrb[4].mxu0 %vm66_vm0, %v694_v15 }
 0x26f   :  { %2147 = vmatprep.mubr.msk.f32.mxu0 %vm66_vm0, %v696_v16  ;;  %2167 = vmatpush3.msra.mxu0 %v830_v55 }
 0x270   :  { %2289 = vmatpush3.bf16.msra.mxu1 %v2286_v53  ;;  %2176 = vmatprep.subr.mxu0 %v828_v54 }
 0x271   :  { %2156 = vmatprep.subr.mxu1 %v828_v54 }
 0x272   :  { %2148 = vmatmul.mubr.msk.f32.gmra.mrb[6].mxu0 %vm66_vm0, %v698_v18 }
 0x273   :  { %2150 = vmatprep.mubr.msk.f32.mxu0 %vm66_vm0, %v700_v19 }
 0x276   :  { %2151 = vmatmul.mubr.msk.f32.gmra.mrb[8].mxu0 %vm66_vm0, %v702_v17 }
 0x277   :  { %2153 = vmatprep.mubr.msk.f32.mxu0 %vm66_vm0, %v704_v21 }
 0x27a   :  { %2154 = vmatmul.mubr.msk.f32.gmra.mrb[10].mxu0 %vm66_vm0, %v706_v20 }
 0x335   :  { %v445_v23 = vpop.f32.mrb[4].mxu1 }
 0x336   :  { %v446_v24 = vadd.f32 %v1915_v22, %v445_v23  ;;  %v2097_v25 = vpop.f32.mrb[5].mxu1 }
 0x338   :  { %v546_v27 = vsel %vm545_vm4, %v446_v24, -inf }
 0x339   :  { %v541_v28 = vpop.f32.mrb[2].mxu0  ;;  %547 = vmax.xlane.f32.xlu0 %v546_v27 }
 0x33a   :  { %v542_v29 = vadd.f32 %v1916_v26, %v541_v28  ;;  %v2116_v30 = vpop.f32.mrb[3].mxu0 }
 0x33c   :  { %v549_v31 = vsel %vm545_vm4, %v542_v29, -inf }
 0x33d   :  { %550 = vmax.xlane.f32.xlu1 %v549_v31 }
 0x341   :  { %v2146_v32 = vpop.f32.mrb[4].mxu0 }
 0x342   :  { %v789_v35 = vpop.f32.mrb[5].mxu0 }
 0x345   :  { %v2149_v36 = vpop.f32.mrb[6].mxu0 }
 0x346   :  { %v799_v37 = vpop.f32.mrb[7].mxu0 }
 0x349   :  { %v2152_v41 = vpop.f32.mrb[8].mxu0 }
 0x34a   :  { %v809_v42 = vpop.f32.mrb[9].mxu0 }
 0x34d   :  { %v2155_v46 = vpop.f32.mrb[10].mxu0 }
 0x34e   :  { %v819_v47 = vpop.f32.mrb[11].mxu0 }
 0x366   :  { %832 = vxpose.xlu0.b32.start.end [1/1] (short) (narrow) %v789_v35, 16 }
 0x36b   :  { %928 = vxpose.xlu0.b32.start.end [1/1] (short) (narrow) %v2149_v36, 16 }
 0x370   :  { %864 = vxpose.xlu1.b32.start.end [1/1] (short) (narrow) %v2146_v32, 16  ;;  %896 = vxpose.xlu0.b32.start.end [1/1] (short) (narrow) %v799_v37, 16 }
 0x375   :  { %992 = vxpose.xlu1.b32.start.end [1/1] (short) (narrow) %v2152_v41, 16  ;;  %960 = vxpose.xlu0.b32.start.end [1/1] (short) (narrow) %v809_v42, 16 }
 0x37a   :  { %1056 = vxpose.xlu1.b32.start.end [1/1] (short) (narrow) %v2155_v46, 16  ;;  %1024 = vxpose.xlu0.b32.start.end [1/1] (short) (narrow) %v819_v47, 16 }
 0x3c6   :  { %v548_v56 = vpop.xlane.xlu0 %547 }
 0x3c7   :  { %v552_v57 = vsub.f32 %v446_v24, %v548_v56 }
 0x3c9   :  { %v554_v58 = vmul.f32 1.442695, %v552_v57 }
 0x3ca   :  { %v551_v59 = vpop.xlane.xlu1 %550 }
 0x3cb   :  { %2331 = vpow2.f32 %v554_v58  ;;  %v553_v60 = vsub.f32 %v542_v29, %v551_v59 }
 0x3cd   :  { %v556_v61 = vmul.f32 1.442695, %v553_v60 }
 0x3cf   :  { %2333 = vpow2.f32 %v556_v61 }
 0x3d5   :  { %v2656_v62 = vpop.eup %2331 }
 0x3d6   :  { %2133 = vmatprep.mubr.msk.f32.mxu1 %vm545_vm4, %v2656_v62 }
 0x3d9   :  { %v2660_v63 = vpop.eup %2333 }
 0x3da   :  { %2134 = vmatmul.mubr.msk.f32.vlgmr.msra.gmra.mrb[6].mxu1 %vm545_vm4, %v2660_v63 }
 0x3db   :  { %2157 = vmatpush3.msra.mxu1 %v828_v54 }
 0x3dc   :  { %2161 = vmatprep.subr.mxu1 %v829_v0 }
 0x3e6   :  { %v848_v1 = vpop.trf.xlu0 }
 0x3e7   :  { %2158 = vmatprep.mubr.msk.f32.mxu1 %vm154_vm1, %v848_v1 }
 0x3ea   :  { %v849_v2 = vpop.trf.xlu0 }
 0x3eb   :  { %2159 = vmatmul.mubr.msk.f32.vlgmr.msra.gmra.mrb[8].mxu1 %vm154_vm1, %v849_v2 }
 0x3ec   :  { %2162 = vmatpush3.msra.mxu1 %v829_v0 }
 0x3ed   :  { %2171 = vmatprep.subr.mxu1 %v831_v3 }
 0x3ee   :  { %v944_v4 = vpop.trf.xlu0 }
 0x3f0   :  { %v880_v5 = vpop.trf.xlu1 }
 0x3f1   :  { %2163 = vmatprep.mubr.msk.f32.mxu1 %vm154_vm1, %v880_v5 }
 0x3f2   :  { %v945_v6 = vpop.trf.xlu0 }
 0x3f4   :  { %v881_v7 = vpop.trf.xlu1 }
 0x3f5   :  { %2164 = vmatmul.mubr.msk.f32.vlgmr.msra.gmra.mrb[10].mxu1 %vm154_vm1, %v881_v7 }
 0x3f6   :  { %2173 = vmatprep.mubr.msk.f32.mxu1 %vm154_vm1, %v944_v4  ;;  %v912_v8 = vpop.trf.xlu0  ;;  %2172 = vmatpush3.msra.mxu1 %v831_v3 }
 0x3f7   :  { %2168 = vmatprep.mubr.msk.f32.mxu0 %vm154_vm1, %v912_v8  ;;  %2181 = vmatprep.subr.mxu1 %v829_v0 }
 0x3f8   :  { %v1008_v9 = vpop.trf.xlu1 }
 0x3f9   :  { %2174 = vmatmul.mubr.msk.f32.vlgmr.msra.gmra.mrb[12].mxu1 %vm154_vm1, %v945_v6 }
 0x3fa   :  { %v913_v10 = vpop.trf.xlu0  ;;  %2182 = vmatpush3.msra.mxu1 %v829_v0  ;;  %2183 = vmatprep.mubr.msk.f32.mxu1 %vm154_vm1, %v1008_v9 }
 0x3fb   :  { %2169 = vmatmul.mubr.msk.f32.vlgmr.msra.gmra.mrb[12].mxu0 %vm154_vm1, %v913_v10  ;;  %2191 = vmatprep.subr.mxu1 %v831_v3 }
 0x3fc   :  { %2177 = vmatpush3.msra.mxu0 %v828_v54  ;;  %v1009_v11 = vpop.trf.xlu1 }
 0x3fd   :  { %2184 = vmatmul.mubr.msk.f32.vlgmr.msra.gmra.mrb[14].mxu1 %vm154_vm1, %v1009_v11  ;;  %2186 = vmatprep.subr.mxu0 %v830_v55 }
 0x3fe   :  { %v976_v12 = vpop.trf.xlu0  ;;  %2192 = vmatpush3.msra.mxu1 %v831_v3 }
 0x3ff   :  { %2178 = vmatprep.mubr.msk.f32.mxu0 %vm154_vm1, %v976_v12  ;;  %2310 = vmatprep.subr.bf16.mxu1 %v2392_v33 }
 0x400   :  { %v1072_v13 = vpop.trf.xlu1 }
 0x401   :  { %2193 = vmatprep.mubr.msk.f32.mxu1 %vm154_vm1, %v1072_v13 }
 0x402   :  { %v977_v14 = vpop.trf.xlu0 }
 0x403   :  { %2179 = vmatmul.mubr.msk.f32.vlgmr.msra.gmra.mrb[14].mxu0 %vm154_vm1, %v977_v14 }
 0x404   :  { %2187 = vmatpush3.msra.mxu0 %v830_v55  ;;  %v1073_v15 = vpop.trf.xlu1 }
 0x405   :  { %2194 = vmatmul.mubr.msk.f32.vlgmr.msra.gmra.mrb[16].mxu1 %vm154_vm1, %v1073_v15  ;;  %2298 = vmatprep.subr.bf16.mxu0 %v2392_v33 }
 0x406   :  { %v1040_v16 = vpop.trf.xlu0  ;;  %2231 = vmatprep.mubr.msk.f32.mxu1 %vm2393_vm2, %v2394_v34 }
 0x407   :  { %2188 = vmatprep.mubr.msk.f32.mxu0 %vm154_vm1, %v1040_v16 }
 0x40a   :  { %v1041_v18 = vpop.trf.xlu0 }
 0x40b   :  { %2189 = vmatmul.mubr.msk.f32.vlgmr.msra.gmra.mrb[16].mxu0 %vm154_vm1, %v1041_v18 }
 0x40c   :  { %2212 = vmatprep.mubr.msk.f32.mxu0 %vm2393_vm2, %v2394_v34 }
 0x4ad   :  { %v2135_v19 = vpop.f32.mrb[6].mxu1 }
 0x4ae   :  { %v638_v17 = vpop.f32.mrb[7].mxu1 }
 0x4af   :  { %2335 = vrcp.f32 %v638_v17 }
 0x4b0   :  { %2337 = vrcp.f32 %v2135_v19 }
 0x4b9   :  { %v2336_v36 = vpop.eup %2335 }
 0x4ba   :  { %v649_v38 = vmul.f32 %v2336_v36, %v2656_v62  ;;  %v2338_v47 = vpop.eup %2337 }
 0x4bb   :  { %v650_v48 = vmul.f32 %v2338_v47, %v2660_v63 }
 0x4be   :  { %v2160_v21 = vpop.f32.mrb[8].mxu1 }
 0x4bf   :  { %v1160_v20 = vpop.f32.mrb[9].mxu1 }
 0x4c0   :  { %v2299_v22 = vpack.c.bf16 %v2160_v21, %v1160_v20 }
 0x4c2   :  { %2300 = vmatpush3.bf16.msra.mxu0 %v2299_v22 }
 0x4c3   :  { %2301 = vmatprep.subr.bf16.mxu0 %v2392_v33 }
 0x4c8   :  { %v2165_v23 = vpop.f32.mrb[10].mxu1 }
 0x4c9   :  { %v1241_v24 = vpop.f32.mrb[11].mxu1 }
 0x4ca   :  { %v2302_v25 = vpack.c.bf16 %v2165_v23, %v1241_v24 }
 0x4cc   :  { %v2175_v26 = vpop.f32.mrb[12].mxu1  ;;  %2303 = vmatpush3.bf16.msra.mxu0 %v2302_v25 }
 0x4cd   :  { %v1403_v27 = vpop.f32.mrb[13].mxu1  ;;  %2304 = vmatprep.subr.bf16.mxu0 %v2392_v33 }
 0x4ce   :  { %v2308_v28 = vpack.c.bf16 %v2175_v26, %v1403_v27  ;;  %v2170_v29 = vpop.f32.mrb[12].mxu0 }
 0x4cf   :  { %v1322_v34 = vpop.f32.mrb[13].mxu0 }
 0x4d0   :  { %v2305_v30 = vpack.c.bf16 %v2170_v29, %v1322_v34  ;;  %v2185_v31 = vpop.f32.mrb[14].mxu1 }
 0x4d1   :  { %v1565_v32 = vpop.f32.mrb[15].mxu1 }
 0x4d2   :  { %2306 = vmatpush3.bf16.msra.mxu0 %v2305_v30  ;;  %v2314_v35 = vpack.c.bf16 %v2185_v31, %v1565_v32 }
 0x4d3   :  { %2307 = vmatprep.subr.bf16.mxu0 %v2392_v33 }
 0x4d6   :  { %v2180_v37 = vpop.f32.mrb[14].mxu0  ;;  %2309 = vmatpush3.bf16.msra.mxu0 %v2308_v28 }
 0x4d7   :  { %v1484_v39 = vpop.f32.mrb[15].mxu0 }
 0x4d8   :  { %v2311_v40 = vpack.c.bf16 %v2180_v37, %v1484_v39  ;;  %v2195_v41 = vpop.f32.mrb[16].mxu1 }
 0x4d9   :  { %2213 = vmatmul.mubr.msk.f32.vlgmr.msra.gmra.mrb[18].mxu0 %vm545_vm4, %v649_v38  ;;  %v1727_v42 = vpop.f32.mrb[17].mxu1 }
 0x4da   :  { %2312 = vmatpush3.bf16.msra.mxu1 %v2311_v40  ;;  %v2320_v43 = vpack.c.bf16 %v2195_v41, %v1727_v42 }
 0x4db   :  { %2313 = vmatprep.subr.bf16.mxu1 %v2392_v33 }
 0x4de   :  { %v2190_v44 = vpop.f32.mrb[16].mxu0  ;;  %2315 = vmatpush3.bf16.msra.mxu1 %v2314_v35 }
 0x4df   :  { %v1646_v45 = vpop.f32.mrb[17].mxu0  ;;  %2316 = vmatprep.subr.bf16.mxu1 %v2392_v33 }
 0x4e0   :  { %v2317_v46 = vpack.c.bf16 %v2190_v44, %v1646_v45 }
 0x4e2   :  { %2318 = vmatpush3.bf16.msra.mxu1 %v2317_v46 }
 0x4e3   :  { %2319 = vmatprep.subr.bf16.mxu1 %v2392_v33 }
 0x4e6   :  { %2321 = vmatpush3.bf16.msra.mxu1 %v2320_v43 }
 0x4e9   :  { %2232 = vmatmul.mubr.msk.f32.vlgmr.msra.gmra.mrb[18].mxu1 %vm545_vm4, %v650_v48 }
 0x5ac   :  { %v1812_v50 = vpop.f32.mrb[18].mxu0 }
 0x5ad   :  { %v1813_v51 = vadd.f32 %v1961_v49, %v1812_v50  ;;  %v2214_v52 = vpop.f32.mrb[19].mxu0 }
 0x5af   :  { %1889 = vst.msk [vmem:[#allocation5] sm:$0xff] %vm66_vm0, %v1813_v51 }
 0x5bc   :  { %v1885_v53 = vpop.f32.mrb[18].mxu1 }
 0x5bd   :  { %v1886_v54 = vadd.f32 %v1961_v49, %v1885_v53  ;;  %v2233_v33 = vpop.f32.mrb[19].mxu1 }
 0x5bf   :  { %1890 = vst.msk [vmem:[#allocation5 + $0x8] sm:$0xff] %vm66_vm0, %v1886_v54 }
 0x5c0   :  { %2372 = shalt.err (!%p2369_p12)
}
 0x5c1   :  { %s2373_s18 = scalar_lea.hbm %s2733_s11, 256 }
 0x5c2   :  { %p2374_p13 = scmp.ne.s32.totalorder %s2733_s11, %s2373_s18  ;;  %p2377_p0 = scmp.lt.u32.totalorder %s2373_s18, %s2733_s11 }
 0x5c4   :  { %p2379_p1 = pnand %p2377_p0, %p2374_p13 }
 0x5c6   :  { %2382 = shalt.err (!%p2379_p1)
}
 0x5c7   :  { %1902 = dma.vmem_to_hbm [thread:$0]  %s1897_s19, 256, %s2733_s11, [#allocation4], %s2388_s27, %s2388_s27, %s2389_s28  }
 0x5c8   :  { %2385 = dma.done.wait [#allocation4], 256  }
 0x5c9   :  { %2386 = vsyncadd [#allocation4], 4294967040 }
 0x5ca   :  { %1906 = vsyncpa [#allocation3], 1 }
 0x5cb   :  { %1907 = vsyncpa [#allocation4], 1 }

</bundles_post_ra>
